<compile_context>
chip_gen: v7x
topology: tpu7x:2x2x1
jax: 0.10.0
libtpu: 0.0.40
codegen_flags: <defaults>
</compile_context>

<pallas_src>
import jax
import jax.numpy as jnp
from jax import lax
from jax.experimental import pallas as pl
from jax.experimental.pallas import tpu as pltpu

# ----------------------------- model config ---------------------------------
IN_FEATURES = 15          # module adds +1 for the `time` column -> 16
NUM_NODES = (32, 32)      # hidden layer widths
OUT_FEATURES = 1
BN_EPS = 1e-5
D_IN = IN_FEATURES + 1    # after concat with time

# "A @ B^T": contract the last dim of both operands (feature axis).
_NT_DIMS = (((1,), (1,)), ((), ()))


# ------------------------------- kernel -------------------------------------
def _mlp_coxtime_kernel(x_ref, t_ref, a1x_ref, a1t_ref, c1_ref,
                        a2_ref, c2_ref, ao_ref, o_ref):
    """Fused forward for one batch tile (batch on lanes for all intermediates).

    x_ref  : (tb, IN_FEATURES)  batch-major input tile, read straight from HBM
    t_ref  : (1, tb)            time row (lane-dense)
    a1x_ref: (H1, IN_FEATURES)  layer-1 weight, feature columns, BN scale folded
    a1t_ref: (H1, 1)            layer-1 weight column for the `time` feature
    c1_ref : (H1, 1)  f32       folded layer-1 bias
    a2_ref : (H2, H1) f32       layer-2 weight, BN scale folded
    c2_ref : (H2, 1)  f32       folded layer-2 bias (absorbs layer-1 BN shift)
    ao_ref : (1, H2)  f32       output weight row (module has no output bias)
    o_ref  : (1, tb)  f32       lane-dense output row (BN-shift const added on host)
    """
    # Layer 1:  h1^T = W1x @ x^T  +  w1_time (outer) time^T   (no concat needed)
    hx = lax.dot_general(a1x_ref[...], x_ref[...], dimension_numbers=_NT_DIMS,
                         preferred_element_type=jnp.float32)
    ht = a1t_ref[...].astype(jnp.float32) * t_ref[...].astype(jnp.float32)
    h = jnp.maximum(hx + ht + c1_ref[...], 0.0)

    # Layer 2 (f32 throughout; Dropout is an eval-mode no-op)
    h = jnp.dot(a2_ref[...], h, preferred_element_type=jnp.float32)
    h = jnp.maximum(h + c2_ref[...], 0.0)

    # Output projection: out_features=1, bias=False, no output activation.
    o_ref[...] = jnp.dot(ao_ref[...], h,
                         preferred_element_type=jnp.float32).astype(o_ref.dtype)


# -------------------------------- wrapper ------------------------------------
def _round_up(x, m):
    return ((x + m - 1) // m) * m


def _pick_tile(batch, tile_b):
    """Batch tile + grid size.

    Tiny batches: one full-batch tile.  Otherwise lane-dense tiles (multiple of
    128) with at least 2 grid steps so the "parallel" batch axis can shard
    across both TensorCores on megacore / v7x parts.
    """
    if batch <= 256:
        return batch, 1
    tb = min(_round_up(tile_b, 128), _round_up(pl.cdiv(batch, 2), 128))
    tb = max(tb, 128)
    return tb, pl.cdiv(batch, tb)


def mlp_coxtime_forward(inputs, time, folded_params, *, tile_b=8192):
    """Pallas-backed forward of MLPVanillaCoxTime (inference).

    inputs: (B, IN_FEATURES), time: (B, 1)  ->  (B, 1) float32.
    Inputs/time may be float32 or bfloat16; first-layer weights are cast to the
    input dtype (halves input DMA for bf16 producers), accumulation and all
    downstream layers stay float32.
    """
    a1x, a1t, c1, a2, c2, ao, co = folded_params
    h1, h2 = a1x.shape[0], a2.shape[0]

    B = inputs.shape[0]
    assert inputs.shape == (B, IN_FEATURES), inputs.shape
    assert time.shape == (B, 1), time.shape

    # (B, 1) -> (1, B) is a pure reshape (same linear order): no HBM copy.
    t_row = time.reshape(1, B)

    tb, grid = _pick_tile(B, tile_b)
    Bp = tb * grid

    in_dt = inputs.dtype
    a1x_c = a1x.astype(in_dt)
    a1t_c = a1t.astype(in_dt)

    full = lambda shape: pl.BlockSpec(shape, lambda i: (0, 0))

    out_t = pl.pallas_call(
        _mlp_coxtime_kernel,
        out_shape=jax.ShapeDtypeStruct((1, Bp), jnp.float32),
        grid_spec=pltpu.PrefetchScalarGridSpec(
            num_scalar_prefetch=0,
            grid=(grid,),
            in_specs=[
                # Batch-major input tile; the last tile's out-of-bounds rows are
                # clipped by Pallas (unspecified values, discarded via host slice).
                pl.BlockSpec((tb, IN_FEATURES), lambda i: (i, 0)),
                pl.BlockSpec((1, tb), lambda i: (0, i)),      # time row tile
                full((h1, IN_FEATURES)), full((h1, 1)), full((h1, 1)),
                full((h2, h1)), full((h2, 1)),
                full((1, h2)),
            ],
            out_specs=pl.BlockSpec((1, tb), lambda i: (0, i)),  # lane-dense row
        ),
        compiler_params=pltpu.CompilerParams(
            dimension_semantics=("parallel",),
            vmem_limit_bytes=40 * 1024 * 1024),
    )(inputs, t_row, a1x_c, a1t_c, c1, a2, c2, ao)

    # (1, Bp) row -> (B, 1) column (pure reshape + tiny slice); add the scalar
    # from folding layer-2's BN shift through W_out here instead of shipping a
    # (1, 1) VMEM operand into the kernel.
    return out_t.reshape(Bp, 1)[:B] + co


# -------------------------- parameter construction ---------------------------
def init_raw_params(key):
    """PyTorch-style parameters matching MLPVanillaCoxTime.__init__:
       Linear W: kaiming_normal_(nonlinearity='relu'), shape (out, in)
       Linear b: default U(-1/sqrt(fan_in), 1/sqrt(fan_in))
       BatchNorm1d: gamma=1, beta=0, running_mean=0, running_var=1
       Output linear: (1, last_hidden), bias=False.
    """
    dims = (D_IN,) + tuple(NUM_NODES)
    keys = jax.random.split(key, 2 * len(NUM_NODES) + 1)
    layers = []
    ki = 0
    for li in range(len(NUM_NODES)):
        fan_in, fan_out = dims[li], dims[li + 1]
        std = (2.0 / fan_in) ** 0.5
        w = std * jax.random.normal(keys[ki], (fan_out, fan_in), jnp.float32); ki += 1
        bound = 1.0 / (fan_in ** 0.5)
        b = jax.random.uniform(keys[ki], (fan_out,), jnp.float32,
                               minval=-bound, maxval=bound); ki += 1
        gamma = jnp.ones((fan_out,), jnp.float32)
        beta = jnp.zeros((fan_out,), jnp.float32)
        mean = jnp.zeros((fan_out,), jnp.float32)
        var = jnp.ones((fan_out,), jnp.float32)
        layers.append((w, b, gamma, beta, mean, var))
    fan_in = dims[-1]
    std = (2.0 / fan_in) ** 0.5
    wo = std * jax.random.normal(keys[ki], (OUT_FEATURES, fan_in), jnp.float32)
    return layers, wo


def fold_params(layers, wo):
    """Fold Linear bias + inference BatchNorm into the weights (kernel layout).

    Uses ReLU(z)*s == ReLU(z*s), valid only for s > 0 (true for the default BN
    buffers: gamma=1, var>=0).  The additive BN shift t is pushed into the next
    layer's bias (W_next @ t); layer-2's shift through W_out becomes a scalar
    constant added on the host.
    # TODO(synk): if a trained gamma can be negative, keep the scale unfolded
    # (apply it after the ReLU) instead of folding it into the weights.
    """
    (w1, b1, g1, be1, m1, v1), (w2, b2, g2, be2, m2, v2) = layers
    s1 = g1 / jnp.sqrt(v1 + BN_EPS)
    t1 = be1 - m1 * s1
    s2 = g2 / jnp.sqrt(v2 + BN_EPS)
    t2 = be2 - m2 * s2

    a1 = w1 * s1[:, None]                       # (H1, D_IN)
    a1x = a1[:, :IN_FEATURES]                   # (H1, IN_FEATURES) feature part
    a1t = a1[:, IN_FEATURES:]                   # (H1, 1)           time column
    c1 = (b1 * s1)[:, None]                     # (H1, 1)
    a2 = w2 * s2[:, None]                       # (H2, H1)
    c2 = ((w2 @ t1 + b2) * s2)[:, None]         # (H2, 1)
    ao = wo                                     # (1, H2)
    co = (wo @ t2).reshape(1, 1)                # scalar constant (added on host)
    return a1x, a1t, c1, a2, c2, ao, co


# ------------------------------ reference ------------------------------------
def reference_forward(inputs, time, layers, wo):
    """Plain-JAX eval-mode forward from the *raw* (unfolded) parameters."""
    x = jnp.concatenate([inputs, time], axis=1)
    for (w, b, g, be, m, v) in layers:
        x = jnp.maximum(x @ w.T + b, 0.0)
        x = (x - m) / jnp.sqrt(v + BN_EPS) * g + be
    return x @ wo.T


# --------------------------------- main ---------------------------------------
if __name__ == "__main__":
    key = jax.random.PRNGKey(0)
    k_in, k_t, k_p = jax.random.split(key, 3)

    # small demo shapes
    B = 8
    inputs = jax.random.normal(k_in, (B, IN_FEATURES), jnp.float32)
    time = jax.random.normal(k_t, (B, 1), jnp.float32)

    layers, wo = init_raw_params(k_p)
    folded = fold_params(layers, wo)
    ref = reference_forward(inputs, time, layers, wo)

    # single-tile path (tight check against the unfolded reference)
    out = jax.block_until_ready(mlp_coxtime_forward(inputs, time, folded))
    assert out.shape == (B, OUT_FEATURES), out.shape
    assert jnp.allclose(out, ref, atol=1e-4, rtol=1e-4), (out, ref)

    # multi-tile + ragged-tail path: grid > 1, 128-multiple lane-dense tiles,
    # batch not a multiple of the tile (tail handled by clipped edge blocks,
    # no jnp.pad copy).
    B2 = 600
    k2, k3 = jax.random.split(jax.random.PRNGKey(1))
    inputs2 = jax.random.normal(k2, (B2, IN_FEATURES), jnp.float32)
    time2 = jax.random.normal(k3, (B2, 1), jnp.float32)
    out2 = jax.block_until_ready(
        mlp_coxtime_forward(inputs2, time2, folded, tile_b=256))
    ref2 = reference_forward(inputs2, time2, layers, wo)
    assert out2.shape == (B2, OUT_FEATURES)
    assert jnp.allclose(out2, ref2, atol=1e-4, rtol=1e-4)

    # bf16-input path: only the input DMA + first-layer weights follow bf16,
    # accumulation and downstream layers stay f32.  (In production the producer
    # should emit bf16 directly; the casts below are demo-only.)
    out_bf = jax.block_until_ready(
        mlp_coxtime_forward(inputs2.astype(jnp.bfloat16),
                            time2.astype(jnp.bfloat16), folded, tile_b=256))
    assert out_bf.shape == (B2, OUT_FEATURES)
    assert jnp.allclose(out_bf, ref2, atol=1e-1, rtol=1e-1)

    # TODO(synk): training-mode Dropout and BatchNorm running-stat updates are
    # not implemented (inference / eval-mode forward only).
    print("KERNEL_OK")
</pallas_src>

<mosaic_0001>
module attributes {stable_mosaic.version = 11 : i64} {
  func.func @_mlp_coxtime_kernel(%arg0: i32, %arg1: memref<8x15xf32, #tpu.memory_space<vmem>>, %arg2: memref<1x8xf32, #tpu.memory_space<vmem>>, %arg3: memref<32x15xf32, #tpu.memory_space<vmem>>, %arg4: memref<32x1xf32, #tpu.memory_space<vmem>>, %arg5: memref<32x1xf32, #tpu.memory_space<vmem>>, %arg6: memref<32x32xf32, #tpu.memory_space<vmem>>, %arg7: memref<32x1xf32, #tpu.memory_space<vmem>>, %arg8: memref<1x32xf32, #tpu.memory_space<vmem>>, %arg9: memref<1x8xf32, #tpu.memory_space<vmem>>) attributes {dimension_semantics = [#tpu.dimension_semantics<parallel>], iteration_bounds = array<i64: 1>, scalar_prefetch = 0 : i64, scratch_operands = 0 : i64, tpu.core_type = #tpu.core_type<tc>, window_params = [{transform_indices = @transform_0, window_bounds = array<i64: 8, 15>}, {transform_indices = @transform_1, window_bounds = array<i64: 1, 8>}, {pipeline_mode = #tpu.pipeline_mode<synchronous>, transform_indices = @transform_2, window_bounds = array<i64: 32, 15>}, {pipeline_mode = #tpu.pipeline_mode<synchronous>, transform_indices = @transform_3, window_bounds = array<i64: 32, 1>}, {pipeline_mode = #tpu.pipeline_mode<synchronous>, transform_indices = @transform_4, window_bounds = array<i64: 32, 1>}, {pipeline_mode = #tpu.pipeline_mode<synchronous>, transform_indices = @transform_5, window_bounds = array<i64: 32, 32>}, {pipeline_mode = #tpu.pipeline_mode<synchronous>, transform_indices = @transform_6, window_bounds = array<i64: 32, 1>}, {pipeline_mode = #tpu.pipeline_mode<synchronous>, transform_indices = @transform_7, window_bounds = array<i64: 1, 32>}, {transform_indices = @transform_8, window_bounds = array<i64: 1, 8>}]} {
    %c0 = arith.constant 0 : index
    %c0_0 = arith.constant 0 : index
    %0 = vector.load %arg3[%c0, %c0_0] : memref<32x15xf32, #tpu.memory_space<vmem>>, vector<32x15xf32>
    %c0_1 = arith.constant 0 : index
    %c0_2 = arith.constant 0 : index
    %1 = vector.load %arg1[%c0_1, %c0_2] : memref<8x15xf32, #tpu.memory_space<vmem>>, vector<8x15xf32>
    %cst = arith.constant dense<0.000000e+00> : vector<32x8xf32>
    %2 = tpu.matmul %0, %1, %cst {dimension_numbers = #tpu.dot_dimension_numbers<[1], [1], [0], [0], [0, 0, 1, 0], [], []>} : vector<32x15xf32>, vector<8x15xf32>, vector<32x8xf32> -> vector<32x8xf32>
    %c0_3 = arith.constant 0 : index
    %c0_4 = arith.constant 0 : index
    %3 = vector.load %arg4[%c0_3, %c0_4] : memref<32x1xf32, #tpu.memory_space<vmem>>, vector<32x1xf32>
    %c0_5 = arith.constant 0 : index
    %c0_6 = arith.constant 0 : index
    %4 = vector.load %arg2[%c0_5, %c0_6] : memref<1x8xf32, #tpu.memory_space<vmem>>, vector<1x8xf32>
    %5 = vector.broadcast %3 : vector<32x1xf32> to vector<32x8xf32>
    %6 = vector.broadcast %4 : vector<1x8xf32> to vector<32x8xf32>
    %7 = arith.mulf %5, %6 : vector<32x8xf32>
    %8 = arith.addf %2, %7 : vector<32x8xf32>
    %c0_7 = arith.constant 0 : index
    %c0_8 = arith.constant 0 : index
    %9 = vector.load %arg5[%c0_7, %c0_8] : memref<32x1xf32, #tpu.memory_space<vmem>>, vector<32x1xf32>
    %10 = vector.broadcast %9 : vector<32x1xf32> to vector<32x8xf32>
    %11 = arith.addf %8, %10 : vector<32x8xf32>
    %cst_9 = arith.constant 0.000000e+00 : f32
    %12 = vector.broadcast %cst_9 : f32 to vector<32x8xf32>
    %13 = arith.maximumf %11, %12 : vector<32x8xf32>
    %c0_10 = arith.constant 0 : index
    %c0_11 = arith.constant 0 : index
    %14 = vector.load %arg6[%c0_10, %c0_11] : memref<32x32xf32, #tpu.memory_space<vmem>>, vector<32x32xf32>
    %cst_12 = arith.constant dense<0.000000e+00> : vector<32x8xf32>
    %15 = tpu.matmul %14, %13, %cst_12 {dimension_numbers = #tpu.dot_dimension_numbers<[1], [0], [0], [1], [0, 0, 1, 1], [], []>} : vector<32x32xf32>, vector<32x8xf32>, vector<32x8xf32> -> vector<32x8xf32>
    %c0_13 = arith.constant 0 : index
    %c0_14 = arith.constant 0 : index
    %16 = vector.load %arg7[%c0_13, %c0_14] : memref<32x1xf32, #tpu.memory_space<vmem>>, vector<32x1xf32>
    %17 = vector.broadcast %16 : vector<32x1xf32> to vector<32x8xf32>
    %18 = arith.addf %15, %17 : vector<32x8xf32>
    %cst_15 = arith.constant 0.000000e+00 : f32
    %19 = vector.broadcast %cst_15 : f32 to vector<32x8xf32>
    %20 = arith.maximumf %18, %19 : vector<32x8xf32>
    %c0_16 = arith.constant 0 : index
    %c0_17 = arith.constant 0 : index
    %21 = vector.load %arg8[%c0_16, %c0_17] : memref<1x32xf32, #tpu.memory_space<vmem>>, vector<1x32xf32>
    %cst_18 = arith.constant dense<0.000000e+00> : vector<1x8xf32>
    %22 = tpu.matmul %21, %20, %cst_18 {dimension_numbers = #tpu.dot_dimension_numbers<[1], [0], [0], [1], [0, 0, 1, 1], [], []>} : vector<1x32xf32>, vector<32x8xf32>, vector<1x8xf32> -> vector<1x8xf32>
    %c0_19 = arith.constant 0 : index
    %c0_20 = arith.constant 0 : index
    %23 = vector.load %arg9[%c0_19, %c0_20] : memref<1x8xf32, #tpu.memory_space<vmem>>, vector<1x8xf32>
    tpu.vector_store %arg9[%c0_19, %c0_20], %22 {strides = array<i32>} : memref<1x8xf32, #tpu.memory_space<vmem>>, vector<1x8xf32>,
    return
  }
  func.func @transform_0(%arg0: i32) -> (i32, i32) {
    %c0_i32 = arith.constant 0 : i32
    %c0_i32_0 = arith.constant 0 : i32
    return %arg0, %c0_i32 : i32, i32
  }
  func.func @transform_1(%arg0: i32) -> (i32, i32) {
    %c0_i32 = arith.constant 0 : i32
    %c0_i32_0 = arith.constant 0 : i32
    return %c0_i32, %arg0 : i32, i32
  }
  func.func @transform_2(%arg0: i32) -> (i32, i32) {
    %c0_i32 = arith.constant 0 : i32
    %c0_i32_0 = arith.constant 0 : i32
    %c0_i32_1 = arith.constant 0 : i32
    return %c0_i32, %c0_i32_0 : i32, i32
  }
  func.func @transform_3(%arg0: i32) -> (i32, i32) {
    %c0_i32 = arith.constant 0 : i32
    %c0_i32_0 = arith.constant 0 : i32
    %c0_i32_1 = arith.constant 0 : i32
    return %c0_i32, %c0_i32_0 : i32, i32
  }
  func.func @transform_4(%arg0: i32) -> (i32, i32) {
    %c0_i32 = arith.constant 0 : i32
    %c0_i32_0 = arith.constant 0 : i32
    %c0_i32_1 = arith.constant 0 : i32
    return %c0_i32, %c0_i32_0 : i32, i32
  }
  func.func @transform_5(%arg0: i32) -> (i32, i32) {
    %c0_i32 = arith.constant 0 : i32
    %c0_i32_0 = arith.constant 0 : i32
    %c0_i32_1 = arith.constant 0 : i32
    return %c0_i32, %c0_i32_0 : i32, i32
  }
  func.func @transform_6(%arg0: i32) -> (i32, i32) {
    %c0_i32 = arith.constant 0 : i32
    %c0_i32_0 = arith.constant 0 : i32
    %c0_i32_1 = arith.constant 0 : i32
    return %c0_i32, %c0_i32_0 : i32, i32
  }
  func.func @transform_7(%arg0: i32) -> (i32, i32) {
    %c0_i32 = arith.constant 0 : i32
    %c0_i32_0 = arith.constant 0 : i32
    %c0_i32_1 = arith.constant 0 : i32
    return %c0_i32, %c0_i32_0 : i32, i32
  }
  func.func @transform_8(%arg0: i32) -> (i32, i32) {
    %c0_i32 = arith.constant 0 : i32
    %c0_i32_0 = arith.constant 0 : i32
    return %c0_i32, %arg0 : i32, i32
  }
}

</mosaic_0001>

<bundles_post_ra>
// kernel: tpu_custom_call.1
= control target key start
LH: loop header
LB: loop body
LE: loop exit
PB: predicated region body
PF: predicated region fallthrough
CT: control target
= control target key end

     0   :  { %vm70_vm0 = vcmask 121856   ;;  %v530_v4 = vmov 0   ;;  %s672_s0 = inlined_call_operand.vmem [shape: f32[8,15], index: 0, kind: input, shape index: {}]   ;;  %s673_s1 = inlined_call_operand.vmem [shape: f32[1,8], index: 1, kind: input, shape index: {}]   ;;  %s674_s2 = inlined_call_operand.vmem [shape: f32[32,15], index: 2, kind: input, shape index: {}]   ;;  %s675_s3 = inlined_call_operand.vmem [shape: f32[32,1], index: 3, kind: input, shape index: {}]   ;;  %s676_s4 = inlined_call_operand.vmem [shape: f32[32,1], index: 4, kind: input, shape index: {}]   ;;  %s677_s5 = inlined_call_operand.vmem [shape: f32[32,32], index: 5, kind: input, shape index: {}]   ;;  %s678_s6 = inlined_call_operand.vmem [shape: f32[32,1], index: 6, kind: input, shape index: {}]   ;;  %s679_s7 = inlined_call_operand.vmem [shape: f32[1,32], index: 7, kind: input, shape index: {}]   ;;  %s680_s8 = inlined_call_operand.hbm [shape: f32[1,8], index: 8, kind: output, shape index: {}]  }
   0x1   :  { %v34_v0 = vld [vmem:[%s672_s0] sm:$0xff]  ;;  %v37_v2 = vld [vmem:[%s675_s3 + $0x10] sm:$0xff]  ;;  %v31_v3 = vld [vmem:[%s674_s2 + $0x8] sm:$0xff]  ;;  %505 = vset.pattern.permute.xlu1 %v530_v4  ;;  %504 = vset.pattern.permute.xlu0 %v530_v4 }
   0x2   :  { %v30_v1 = vld [vmem:[%s674_s2] sm:$0xff]  ;;  %452 = vmatprep.subr.msk.mxu0 %vm70_vm0, %v34_v0  ;;  %v32_v6 = vld [vmem:[%s674_s2 + $0x10] sm:$0xff]  ;;  %52 = vperm.xlu1 %505, %v37_v2   ;;  %v38_v7 = vld [vmem:[%s675_s3 + $0x18] sm:$0xff] }
   0x3   :  { %454 = vmatprep.mubr.msk.f32.mxu0 %vm70_vm0, %v30_v1  ;;  %453 = vmatpush3.xpose.msk.msra.mxu0 %vm70_vm0, %v34_v0  ;;  %v35_v5 = vld [vmem:[%s675_s3] sm:$0xff]  ;;  %v36_v8 = vld [vmem:[%s675_s3 + $0x8] sm:$0xff]  ;;  %v33_v9 = vld [vmem:[%s674_s2 + $0x18] sm:$0xff] }
   0x4   :  { %42 = vperm.xlu0 %504, %v35_v5  }
   0x6   :  { %455 = vmatmul.mubr.msk.f32.vlgmr.msra.gmra.mrb[0].mxu0 %vm70_vm0, %v31_v3 }
   0x7   :  { %457 = vmatprep.mubr.msk.f32.mxu0 %vm70_vm0, %v32_v6 }
   0x8   :  { %13 = vsyncpa [#allocation3], 0  ;;  %57 = vperm.xlu1 %505, %v38_v7   ;;  %47 = vperm.xlu0 %504, %v36_v8   ;;  %v172_v10 = vld [vmem:[%s676_s4 + $0x8] sm:$0xff]  ;;  %v171_v11 = vld [vmem:[%s676_s4] sm:$0xff]  ;;  %vm231_vm1 = vcmask 261120   ;;  %v531_v53 = vmov 0.0|0.0  }
   0x9   :  { %v174_v12 = vld [vmem:[%s676_s4 + $0x18] sm:$0xff]  ;;  %v173_v13 = vld [vmem:[%s676_s4 + $0x10] sm:$0xff]  ;;  %v208_v14 = vld [vmem:[%s678_s6 + $0x8] sm:$0xff]  ;;  %493 = vmatprep.subr.bf16.mxu0 %v531_v53  ;;  %vm532_vm2 = vmmov 0   ;;  %v533_v54 = vmov 0.0   ;;  %s534_s21 = smov [#allocation2]  }
   0xa   :  { %458 = vmatmul.mubr.msk.f32.gmra.mrb[2].mxu0 %vm70_vm0, %v33_v9  ;;  %v207_v15 = vld [vmem:[%s678_s6] sm:$0xff]  ;;  %v210_v16 = vld [vmem:[%s678_s6 + $0x18] sm:$0xff]  ;;  %v209_v17 = vld [vmem:[%s678_s6 + $0x10] sm:$0xff]  ;;  %s415_s22 = sshll.u32 %s534_s21, 4  ;;  %vm407_vm3 = vcmask 57344   ;;  %s416_s22 = int_to_ptr.vmem [resolvable:$true] %s415_s22 }
   0xb   :  { %v203_v18 = vld [vmem:[%s677_s5] sm:$0xff]  ;;  %v204_v50 = vld [vmem:[%s677_s5 + $0x8] sm:$0xff]  ;;  %v205_v51 = vld [vmem:[%s677_s5 + $0x10] sm:$0xff]  ;;  %482 = vmatprep.mubr.msk.f32.mxu0 %vm532_vm2, %v533_v54  ;;  %s506_s23 = scalar_lea.vmem %s416_s22, 16  ;;  %s510_s24 = scalar_lea.vmem %s416_s22, 32 }
   0xc   :  { %182 = vperm.xlu1 %505, %v172_v10   ;;  %177 = vperm.xlu0 %504, %v171_v11   ;;  %v423_v23 = vld [vmem:[%s673_s1] ss:$0 sm:$0xff]  ;;  %v206_v52 = vld [vmem:[%s677_s5 + $0x18] sm:$0xff]  ;;  %p507_p0 = scmp.ne.s32.totalorder %s416_s22, %s506_s23  ;;  %p511_p1 = scmp.lt.s32.totalorder %s416_s22, %s416_s22 }
   0xd   :  { %468 = vmatprep.mubr.msk.f32.mxu1 %vm231_vm1, %v203_v18  ;;  %v333_v9 = vld [vmem:[%s679_s7] sm:$0x1]  ;;  %p512_p2 = scmp.lt.s32.totalorder %s510_s24, %s506_s23 }
   0xf   :  { %p513_p3 = por %p512_p2, %p511_p1 }
  0x10   :  { %192 = vperm.xlu1 %505, %v174_v12   ;;  %187 = vperm.xlu0 %504, %v173_v13  }
  0x11   :  { %p514_p4 = pnand %p513_p3, %p507_p0 }
  0x14   :  { %218 = vperm.xlu1 %505, %v208_v14   ;;  %213 = vperm.xlu0 %504, %v207_v15  }
  0x18   :  { %228 = vperm.xlu1 %505, %v210_v16   ;;  %223 = vperm.xlu0 %504, %v209_v17  }
  0x81   :  { %v53_v19 = vpop.permute.xlu1 %52 }
  0x82   :  { %v68_v34 = vmul.f32 %v423_v23, %v53_v19 }
  0x83   :  { %v43_v20 = vpop.permute.xlu0 %42 }
  0x84   :  { %v66_v25 = vmul.f32 %v423_v23, %v43_v20 }
  0x87   :  { %v58_v21 = vpop.permute.xlu1 %57  ;;  %v48_v22 = vpop.permute.xlu0 %47 }
  0x88   :  { %v67_v24 = vmul.f32 %v423_v23, %v48_v22  ;;  %v69_v32 = vmul.f32 %v423_v23, %v58_v21 }
  0x8b   :  { %v183_v26 = vpop.permute.xlu1 %182  ;;  %v178_v28 = vpop.permute.xlu0 %177 }
  0x8f   :  { %v193_v40 = vpop.permute.xlu1 %192  ;;  %v188_v43 = vpop.permute.xlu0 %187 }
  0x93   :  { %v219_v55 = vpop.permute.xlu1 %218  ;;  %v214_v56 = vpop.permute.xlu0 %213 }
  0x97   :  { %v229_v62 = vpop.permute.xlu1 %228  ;;  %v224_v1 = vpop.permute.xlu0 %223 }
  0xd9   :  { %v456_v27 = vpop.f32.mrb[0].mxu0 }
  0xda   :  { %v158_v29 = vadd.f32 %v456_v27, %v67_v24  ;;  %v152_v30 = vpop.f32.mrb[1].mxu0 }
  0xdb   :  { %v153_v31 = vadd.f32 %v152_v30, %v66_v25 }
  0xdc   :  { %v196_v33 = vadd.f32 %v183_v26, %v158_v29 }
  0xdd   :  { %v195_v35 = vadd.f32 %v178_v28, %v153_v31  ;;  %v459_v36 = vpop.f32.mrb[2].mxu0 }
  0xde   :  { %v200_v37 = vmax.f32 %v196_v33, 0.0  ;;  %v168_v38 = vadd.f32 %v459_v36, %v69_v32  ;;  %v162_v39 = vpop.f32.mrb[3].mxu0 }
  0xdf   :  { %v199_v41 = vmax.f32 %v195_v35, 0.0  ;;  %v163_v42 = vadd.f32 %v162_v39, %v68_v34 }
  0xe0   :  { %v198_v44 = vadd.f32 %v193_v40, %v168_v38 }
  0xe1   :  { %v197_v45 = vadd.f32 %v188_v43, %v163_v42  ;;  %v485_v46 = vpack.c.bf16 %v200_v37, %v199_v41 }
  0xe2   :  { %v202_v47 = vmax.f32 %v198_v44, 0.0 }
  0xe3   :  { %v201_v48 = vmax.f32 %v197_v45, 0.0  ;;  %486 = vmatprep.subr.bf16.mxu1 %v485_v46 }
  0xe4   :  { %488 = vmatpush3.bf16.msra.mxu1 %v485_v46 }
  0xe5   :  { %v489_v49 = vpack.c.bf16 %v202_v47, %v201_v48 }
  0xe7   :  { %490 = vmatprep.subr.bf16.mxu1 %v489_v49 }
  0xe8   :  { %492 = vmatpush3.bf16.msra.mxu1 %v489_v49 }
  0xeb   :  { %469 = vmatmul.mubr.msk.f32.vlgmr.msra.gmra.mrb[0].mxu1 %vm231_vm1, %v204_v50 }
  0xec   :  { %471 = vmatprep.mubr.msk.f32.mxu1 %vm231_vm1, %v205_v51 }
  0xef   :  { %472 = vmatmul.mubr.msk.f32.gmra.mrb[2].mxu1 %vm231_vm1, %v206_v52 }
 0x1be   :  { %v470_v57 = vpop.f32.mrb[0].mxu1 }
 0x1bf   :  { %v316_v58 = vadd.f32 %v470_v57, %v219_v55  ;;  %v310_v59 = vpop.f32.mrb[1].mxu1 }
 0x1c0   :  { %v311_v60 = vadd.f32 %v310_v59, %v214_v56 }
 0x1c1   :  { %v330_v61 = vmax.f32 %v316_v58, 0.0 }
 0x1c2   :  { %v329_v63 = vmax.f32 %v311_v60, 0.0  ;;  %v473_v0 = vpop.f32.mrb[2].mxu1 }
 0x1c3   :  { %v326_v2 = vadd.f32 %v473_v0, %v229_v62  ;;  %v320_v3 = vpop.f32.mrb[3].mxu1 }
 0x1c4   :  { %v494_v4 = vpack.c.bf16 %v330_v61, %v329_v63  ;;  %v321_v5 = vadd.f32 %v320_v3, %v224_v1 }
 0x1c5   :  { %v332_v6 = vmax.f32 %v326_v2, 0.0 }
 0x1c6   :  { %v331_v7 = vmax.f32 %v321_v5, 0.0  ;;  %495 = vmatpush3.bf16.msra.mxu0 %v494_v4 }
 0x1c7   :  { %496 = vmatprep.subr.bf16.mxu0 %v531_v53 }
 0x1c8   :  { %v497_v8 = vpack.c.bf16 %v332_v6, %v331_v7 }
 0x1ca   :  { %498 = vmatpush3.bf16.msra.mxu0 %v497_v8 }
 0x1cd   :  { %483 = vmatmul.mubr.msk.f32.vlgmr.msra.gmra.mrb[4].mxu0 %vm231_vm1, %v333_v9 }
 0x2a0   :  { %v403_v10 = vpop.f32.mrb[4].mxu0 }
 0x2a1   :  { %408 = vst.msk [vmem:[#allocation2] sm:$0x1] %vm407_vm3, %v403_v10  ;;  %v484_v11 = vpop.f32.mrb[5].mxu0 }
 0x2a2   :  { %517 = shalt.err (!%p514_p4)
}
 0x2a3   :  { %s518_s7 = scalar_lea.hbm %s680_s8, 16 }
 0x2a4   :  { %p519_p5 = scmp.ne.s32.totalorder %s680_s8, %s518_s7  ;;  %p522_p6 = scmp.lt.u32.totalorder %s518_s7, %s680_s8 }
 0x2a6   :  { %p524_p7 = pnand %p522_p6, %p519_p5 }
 0x2a8   :  { %527 = shalt.err (!%p524_p7)
}
 0x2a9   :  { %418 = dma.vmem_to_hbm [thread:$0]  %s416_s22, 16, %s680_s8, [#allocation3]  }
 0x2aa   :  { %528 = dma.done.wait [#allocation3], 16  }
 0x2ab   :  { %529 = vsyncadd [#allocation3], 4294967280 }
 0x2ac   :  { %422 = vsyncpa [#allocation3], 1 }

</bundles_post_ra>
